<compile_context>
chip_gen: v7x
topology: tpu7x:2x2x1
jax: 0.10.0
libtpu: 0.0.40
codegen_flags: <defaults>
</compile_context>

<pallas_src>
import jax
import jax.numpy as jnp
from jax.experimental import pallas as pl
from jax.experimental.pallas import tpu as pltpu

EPS = 1e-12
EPS2 = EPS * EPS          # clamp on the SQUARED norm == max(||v||, eps) post-sqrt
SCALE = 30.0

# Physical VMEM of the local chip (v5e/v6e: 128 MiB, v7x: 64 MiB per TC).
try:
    _VMEM_BYTES = int(pltpu.get_tpu_info().vmem_capacity_bytes)
except Exception:  # pragma: no cover - be conservative if the query fails
    _VMEM_BYTES = 64 << 20


def _round_up(v: int, m: int) -> int:
    return (v + m - 1) // m * m


def _cdiv(a: int, b: int) -> int:
    return (a + b - 1) // b


def _pick_tile(size: int, preferred: int, align: int) -> int:
    """Tile for one dim: a single block (rounded to `align`) if the dim fits in
    `preferred`; otherwise the multiple of `align` <= preferred that minimizes
    padding waste (ties -> larger tile)."""
    if size <= preferred:
        return _round_up(size, align)
    best_t, best_waste = align, None
    t = (preferred // align) * align
    while t >= align:
        waste = _round_up(size, t) - size
        if best_waste is None or waste < best_waste:
            best_t, best_waste = t, waste
        t -= align
    return best_t


# --------------------------------------------------------------------------
# Fused prepass kernels: read operand once, emit bf16 operand + inverse norms
# --------------------------------------------------------------------------
def _x_prep_kernel(x_ref, xb_ref, rinv_ref, ssq_ref):
    """Cast x block to the matmul dtype and accumulate row sum-of-squares.
    Grid: (M tiles, K tiles); K is last ("arbitrary")."""
    k = pl.program_id(1)
    x = x_ref[...].astype(jnp.float32)

    @pl.when(k == 0)
    def _():
        ssq_ref[...] = jnp.zeros_like(ssq_ref)

    ssq_ref[...] += jnp.sum(x * x, axis=1, keepdims=True)
    xb_ref[...] = x.astype(xb_ref.dtype)

    @pl.when(k == pl.num_programs(1) - 1)
    def _():
        ssq = ssq_ref[...]
        rinv = jax.lax.rsqrt(jnp.maximum(ssq, EPS2))   # EUP rsqrt
        # Padded / all-zero rows: emit 0 (not 1/eps) so padded output regions
        # remain exactly 0 even if the accumulator ever picks up garbage.
        rinv_ref[...] = jnp.where(ssq > 0.0, rinv, 0.0)


def _w_prep_kernel(w_ref, wb_ref, cinv_ref, ssq_ref):
    """Cast W block to the matmul dtype and accumulate column sum-of-squares;
    SCALE is folded into the emitted inverse norms.
    Grid: (N tiles, K tiles); K is last ("arbitrary")."""
    k = pl.program_id(1)
    w = w_ref[...].astype(jnp.float32)

    @pl.when(k == 0)
    def _():
        ssq_ref[...] = jnp.zeros_like(ssq_ref)

    ssq_ref[...] += jnp.sum(w * w, axis=0, keepdims=True)
    wb_ref[...] = w.astype(wb_ref.dtype)

    @pl.when(k == pl.num_programs(1) - 1)
    def _():
        ssq = ssq_ref[...]
        cinv = SCALE * jax.lax.rsqrt(jnp.maximum(ssq, EPS2))
        cinv_ref[...] = jnp.where(ssq > 0.0, cinv, 0.0)


# --------------------------------------------------------------------------
# Main tiled matmul kernel with post-matmul normalization epilogue
# --------------------------------------------------------------------------
def _normed_matmul_kernel(x_ref, w_ref, rinv_ref, cinv_ref, o_ref, acc_ref):
    k = pl.program_id(2)

    @pl.when(k == 0)
    def _():
        acc_ref[...] = jnp.zeros_like(acc_ref)

    acc_ref[...] += jnp.dot(x_ref[...], w_ref[...],
                            preferred_element_type=jnp.float32)

    @pl.when(k == pl.num_programs(2) - 1)
    def _():
        # SCALE already folded into cinv; rinv broadcasts (tm,1), cinv (1,tn).
        o_ref[...] = (acc_ref[...] * rinv_ref[...]
                      * cinv_ref[...]).astype(o_ref.dtype)


# --------------------------------------------------------------------------
# Wrapper
# --------------------------------------------------------------------------
def normed_linear(x: jax.Array, weight: jax.Array, *,
                  tm: int | None = None,
                  tn: int | None = None,
                  tk: int | None = None,
                  matmul_dtype=jnp.bfloat16,
                  out_dtype=None) -> jax.Array:
    n, in_f = x.shape
    in_f2, out_f = weight.shape
    assert in_f == in_f2
    out_dtype = out_dtype or x.dtype
    op_bytes = jnp.dtype(matmul_dtype).itemsize
    out_bytes = jnp.dtype(out_dtype).itemsize

    # ------------------ tile selection ------------------------------------
    # Arithmetic intensity per K step is tm*tn/(tm+tn) FLOP per operand byte;
    # large tiles push the matmul above every generation's HBM ridge point.
    pref_mn = 1024 if _VMEM_BYTES >= (96 << 20) else 768
    budget = min(_VMEM_BYTES // 2, 48 << 20)   # VMEM working-set budget

    if tm is None:
        tm = _pick_tile(n, pref_mn, 8 if n <= 128 else 128)
    if tn is None:
        tn = _pick_tile(out_f, pref_mn, 128 if out_f <= 256 else 256)
    if tk is None:
        tk = _pick_tile(in_f, 1024, 128 if in_f <= 256 else 256)

    def _vmem_use(tm_, tn_, tk_):
        return (2 * (tm_ * tk_ + tk_ * tn_) * op_bytes   # double-buffered inputs
                + 2 * tm_ * tn_ * out_bytes              # double-buffered output
                + tm_ * tn_ * 4                          # f32 accumulator
                + 4 * (tm_ + tn_) * 4)                   # rinv / cinv

    while _vmem_use(tm, tn, tk) > budget:
        if tk > 512:
            tk = max(512, tk // 2)
        elif tn >= tm and tn > 256:
            tn //= 2
        elif tm > 256:
            tm //= 2
        else:
            break

    # v7x megacore: a single parallel block idles one TensorCore; split when
    # there is enough work.
    if _cdiv(n, tm) * _cdiv(out_f, tn) < 2:
        if tn >= 512 and out_f > tn // 2:
            tn //= 2
        elif tm >= 256 and n > tm // 2:
            tm //= 2

    mp = _round_up(n, tm)
    kp = _round_up(in_f, tk)
    np_pad = _round_up(out_f, tn)

    # Single zero-pad per operand in the ORIGINAL dtype (exact: padded K adds 0
    # to dots and norms; padded rows/cols are zeroed via rinv/cinv and sliced
    # away).  Skipped entirely when the shapes already align.
    x_pad = x if (mp == n and kp == in_f) else jnp.pad(
        x, ((0, mp - n), (0, kp - in_f)))
    w_pad = weight if (kp == in_f and np_pad == out_f) else jnp.pad(
        weight, ((0, kp - in_f), (0, np_pad - out_f)))

    # ------------- fused prepasses: one HBM read per operand ----------------
    x_mm, rinv = pl.pallas_call(
        _x_prep_kernel,
        out_shape=(jax.ShapeDtypeStruct((mp, kp), matmul_dtype),
                   jax.ShapeDtypeStruct((mp, 1), jnp.float32)),
        grid_spec=pltpu.PrefetchScalarGridSpec(
            num_scalar_prefetch=0,
            grid=(mp // tm, kp // tk),
            in_specs=[pl.BlockSpec((tm, tk), lambda i, k: (i, k))],
            out_specs=(pl.BlockSpec((tm, tk), lambda i, k: (i, k)),
                       pl.BlockSpec((tm, 1), lambda i, k: (i, 0))),
            scratch_shapes=[pltpu.VMEM((tm, 1), jnp.float32)]),
        compiler_params=pltpu.CompilerParams(
            dimension_semantics=("parallel", "arbitrary")),
    )(x_pad)

    w_mm, cinv = pl.pallas_call(
        _w_prep_kernel,
        out_shape=(jax.ShapeDtypeStruct((kp, np_pad), matmul_dtype),
                   jax.ShapeDtypeStruct((1, np_pad), jnp.float32)),
        grid_spec=pltpu.PrefetchScalarGridSpec(
            num_scalar_prefetch=0,
            grid=(np_pad // tn, kp // tk),
            in_specs=[pl.BlockSpec((tk, tn), lambda j, k: (k, j))],
            out_specs=(pl.BlockSpec((tk, tn), lambda j, k: (k, j)),
                       pl.BlockSpec((1, tn), lambda j, k: (0, j))),
            scratch_shapes=[pltpu.VMEM((1, tn), jnp.float32)]),
        compiler_params=pltpu.CompilerParams(
            dimension_semantics=("parallel", "arbitrary")),
    )(w_pad)

    # ------------- MXU matmul with cheap scaling epilogue -------------------
    vmem_limit = int(min(_VMEM_BYTES * 7 // 8,
                         max(32 << 20, _vmem_use(tm, tn, tk) + (8 << 20))))

    out_pad = pl.pallas_call(
        _normed_matmul_kernel,
        out_shape=jax.ShapeDtypeStruct((mp, np_pad), out_dtype),
        grid_spec=pltpu.PrefetchScalarGridSpec(
            num_scalar_prefetch=0,
            grid=(mp // tm, np_pad // tn, kp // tk),
            in_specs=[
                pl.BlockSpec((tm, tk), lambda i, j, k: (i, k)),
                pl.BlockSpec((tk, tn), lambda i, j, k: (k, j)),
                pl.BlockSpec((tm, 1), lambda i, j, k: (i, 0)),
                pl.BlockSpec((1, tn), lambda i, j, k: (0, j)),
            ],
            out_specs=pl.BlockSpec((tm, tn), lambda i, j, k: (i, j)),
            scratch_shapes=[pltpu.VMEM((tm, tn), jnp.float32)]),
        compiler_params=pltpu.CompilerParams(
            dimension_semantics=("parallel", "parallel", "arbitrary"),
            vmem_limit_bytes=vmem_limit),
        cost_estimate=pl.CostEstimate(
            flops=2 * mp * kp * np_pad,
            transcendentals=0,
            bytes_accessed=(mp * kp * op_bytes + kp * np_pad * op_bytes
                            + mp * np_pad * out_bytes + (mp + np_pad) * 4)),
    )(x_mm, w_mm, rinv, cinv)

    if mp == n and np_pad == out_f:
        return out_pad
    return out_pad[:n, :out_f]


# --------------------------------------------------------------------------
# Weight init mirroring: Tensor(in,out).uniform_(-1,1).renorm_(2,1,1e-5).mul_(1e5)
# --------------------------------------------------------------------------
def init_normed_linear_weight(key, in_features, out_features):
    w = jax.random.uniform(key, (in_features, out_features),
                           dtype=jnp.float32, minval=-1.0, maxval=1.0)
    col_norm = jnp.sqrt(jnp.sum(w * w, axis=0, keepdims=True))
    maxnorm = 1e-5
    scale = jnp.where(col_norm > maxnorm, maxnorm / col_norm, 1.0)
    return w * scale * 1e5


def reference_normed_linear(x, weight):
    x = x.astype(jnp.float32)
    w = weight.astype(jnp.float32)
    xn = x / jnp.maximum(jnp.linalg.norm(x, axis=1, keepdims=True), EPS)
    wn = w / jnp.maximum(jnp.linalg.norm(w, axis=0, keepdims=True), EPS)
    return SCALE * (xn @ wn)


if __name__ == "__main__":
    key = jax.random.PRNGKey(0)
    k_x, k_w = jax.random.split(key)

    batch = 8
    in_features = 32
    out_features = 16

    x = jax.random.normal(k_x, (batch, in_features), dtype=jnp.float32)
    weight = init_normed_linear_weight(k_w, in_features, out_features)

    ref = reference_normed_linear(x, weight)

    # Default (perf) path: bf16 MXU operands, f32 accumulation, f32 norms.
    out_bf16 = jax.block_until_ready(normed_linear(x, weight))
    # Exactness-check path: f32 MXU operands.
    out_f32 = jax.block_until_ready(
        normed_linear(x, weight, matmul_dtype=jnp.float32))

    assert out_bf16.shape == (batch, out_features)
    assert out_f32.shape == (batch, out_features)
    assert jnp.allclose(out_f32, ref, atol=1e-4, rtol=1e-4), \
        "f32 path mismatch vs reference"
    # bf16 operand quantization (norms are exact f32) bounds the abs error by
    # ~SCALE * 2 * 2^-9 ~= 0.12; tolerance documented per perf review.
    assert jnp.allclose(out_bf16, ref, atol=2e-1, rtol=5e-2), \
        "bf16 path mismatch vs reference"

    print("KERNEL_OK")
</pallas_src>

<mosaic_0001>
module attributes {stable_mosaic.version = 11 : i64} {
  func.func @_x_prep_kernel(%arg0: i32, %arg1: i32, %arg2: memref<8x128xf32, #tpu.memory_space<vmem>>, %arg3: memref<8x128xbf16, #tpu.memory_space<vmem>>, %arg4: memref<8x1xf32, #tpu.memory_space<vmem>>, %arg5: memref<8x1xf32, #tpu.memory_space<vmem>>) attributes {dimension_semantics = [#tpu.dimension_semantics<parallel>, #tpu.dimension_semantics<arbitrary>], iteration_bounds = array<i64: 1, 1>, scalar_prefetch = 0 : i64, scratch_operands = 1 : i64, tpu.core_type = #tpu.core_type<tc>, window_params = [{transform_indices = @transform_0, window_bounds = array<i64: 8, 128>}, {transform_indices = @transform_1, window_bounds = array<i64: 8, 128>}, {transform_indices = @transform_2, window_bounds = array<i64: 8, 1>}]} {
    %c0 = arith.constant 0 : index
    %c0_0 = arith.constant 0 : index
    %0 = vector.load %arg2[%c0, %c0_0] : memref<8x128xf32, #tpu.memory_space<vmem>>, vector<8x128xf32>
    %c0_i32 = arith.constant 0 : i32
    %1 = arith.cmpi eq, %arg1, %c0_i32 : i32
    %2 = arith.extui %1 : i1 to i32
    %c0_i32_1 = arith.constant 0 : i32
    %3 = arith.cmpi ne, %2, %c0_i32_1 : i32
    scf.if %3 {
      %cst_10 = arith.constant 0.000000e+00 : f32
      %15 = vector.broadcast %cst_10 : f32 to vector<8x1xf32>
      %c0_11 = arith.constant 0 : index
      %c0_12 = arith.constant 0 : index
      %16 = vector.load %arg5[%c0_11, %c0_12] : memref<8x1xf32, #tpu.memory_space<vmem>>, vector<8x1xf32>
      tpu.vector_store %arg5[%c0_11, %c0_12], %15 {strides = array<i32>} : memref<8x1xf32, #tpu.memory_space<vmem>>, vector<8x1xf32>,
    } else {
    }
    %c0_2 = arith.constant 0 : index
    %c0_3 = arith.constant 0 : index
    %4 = vector.load %arg5[%c0_2, %c0_3] : memref<8x1xf32, #tpu.memory_space<vmem>>, vector<8x1xf32>
    %5 = arith.mulf %0, %0 : vector<8x128xf32>
    %cst = arith.constant dense<0.000000e+00> : vector<8xf32>
    %6 = vector.multi_reduction <add>, %5, %cst [1] : vector<8x128xf32> to vector<8xf32>
    %7 = vector.shape_cast %6 : vector<8xf32> to vector<8x1xf32>
    %8 = arith.addf %4, %7 : vector<8x1xf32>
    %c0_4 = arith.constant 0 : index
    %c0_5 = arith.constant 0 : index
    %9 = vector.load %arg5[%c0_4, %c0_5] : memref<8x1xf32, #tpu.memory_space<vmem>>, vector<8x1xf32>
    tpu.vector_store %arg5[%c0_4, %c0_5], %8 {strides = array<i32>} : memref<8x1xf32, #tpu.memory_space<vmem>>, vector<8x1xf32>,
    %10 = arith.truncf %0 : vector<8x128xf32> to vector<8x128xbf16>
    %c0_6 = arith.constant 0 : index
    %c0_7 = arith.constant 0 : index
    %11 = vector.load %arg3[%c0_6, %c0_7] : memref<8x128xbf16, #tpu.memory_space<vmem>>, vector<8x128xbf16>
    tpu.vector_store %arg3[%c0_6, %c0_7], %10 {strides = array<i32>} : memref<8x128xbf16, #tpu.memory_space<vmem>>, vector<8x128xbf16>,
    %c0_i32_8 = arith.constant 0 : i32
    %12 = arith.cmpi eq, %arg1, %c0_i32_8 : i32
    %13 = arith.extui %12 : i1 to i32
    %c0_i32_9 = arith.constant 0 : i32
    %14 = arith.cmpi ne, %13, %c0_i32_9 : i32
    scf.if %14 {
      %c0_10 = arith.constant 0 : index
      %c0_11 = arith.constant 0 : index
      %15 = vector.load %arg5[%c0_10, %c0_11] : memref<8x1xf32, #tpu.memory_space<vmem>>, vector<8x1xf32>
      %cst_12 = arith.constant 1.000000e-24 : f32
      %16 = vector.broadcast %cst_12 : f32 to vector<8x1xf32>
      %17 = arith.maximumf %15, %16 : vector<8x1xf32>
      %18 = math.rsqrt %17 : vector<8x1xf32>
      %cst_13 = arith.constant 0.000000e+00 : f32
      %19 = vector.broadcast %cst_13 : f32 to vector<8x1xf32>
      %20 = arith.cmpf ogt, %15, %19 : vector<8x1xf32>
      %cst_14 = arith.constant 0.000000e+00 : f32
      %21 = vector.broadcast %cst_14 : f32 to vector<8x1xf32>
      %22 = arith.select %20, %18, %21 : vector<8x1xi1>, vector<8x1xf32>
      %c0_15 = arith.constant 0 : index
      %c0_16 = arith.constant 0 : index
      %23 = vector.load %arg4[%c0_15, %c0_16] : memref<8x1xf32, #tpu.memory_space<vmem>>, vector<8x1xf32>
      tpu.vector_store %arg4[%c0_15, %c0_16], %22 {strides = array<i32>} : memref<8x1xf32, #tpu.memory_space<vmem>>, vector<8x1xf32>,
    } else {
    }
    return
  }
  func.func @transform_0(%arg0: i32, %arg1: i32) -> (i32, i32) {
    %c0_i32 = arith.constant 0 : i32
    return %arg0, %arg1 : i32, i32
  }
  func.func @transform_1(%arg0: i32, %arg1: i32) -> (i32, i32) {
    %c0_i32 = arith.constant 0 : i32
    return %arg0, %arg1 : i32, i32
  }
  func.func @transform_2(%arg0: i32, %arg1: i32) -> (i32, i32) {
    %c0_i32 = arith.constant 0 : i32
    %c0_i32_0 = arith.constant 0 : i32
    return %arg0, %c0_i32 : i32, i32
  }
}

</mosaic_0001>

<bundles_post_ra>
// kernel: tpu_custom_call.1
= control target key start
LH: loop header
LB: loop body
LE: loop exit
PB: predicated region body
PF: predicated region fallthrough
CT: control target
= control target key end

     0   :  { %8 = vsyncpa [#allocation4], 0  ;;  %s168_s0 = inlined_call_operand.hbm [shape: f32[8,128], index: 0, kind: input, shape index: {}]   ;;  %s169_s1 = inlined_call_operand.hbm [shape: bf16[8,128], index: 1, kind: output, shape index: {0}]   ;;  %s170_s2 = inlined_call_operand.vmem [shape: f32[8,1], index: 2, kind: output, shape index: {1}]  }
   0x1   :  { %9 = vsyncpa [#allocation5], 0  ;;  %s120_s9 = smov [#allocation3]   ;;  %s72_s13 = scalar_lea.hbm %s168_s0, 128 }
   0x2   :  { %s16_s10 = sshll.u32 %s120_s9, 4  ;;  %p73_p0 = scmp.ne.s32.totalorder %s168_s0, %s72_s13  ;;  %s17_s10 = int_to_ptr.vmem [resolvable:$true] %s16_s10 }
   0x3   :  { %p76_p1 = scmp.lt.u32.totalorder %s72_s13, %s168_s0 }
   0x5   :  { %p78_p2 = pnand %p76_p1, %p73_p0 }
   0x7   :  { %81 = shalt.err (!%p78_p2)
}
   0x8   :  { %s82_s18 = scalar_lea.vmem %s17_s10, 128  ;;  %p87_p4 = scmp.lt.s32.totalorder %s17_s10, %s17_s10 }
   0x9   :  { %p83_p3 = scmp.ne.s32.totalorder %s17_s10, %s82_s18  ;;  %p88_p5 = scmp.lt.s32.totalorder %s82_s18, %s82_s18 }
   0xb   :  { %p89_p6 = por %p88_p5, %p87_p4 }
   0xd   :  { %p90_p7 = pnand %p89_p6, %p83_p3 }
   0xf   :  { %93 = shalt.err (!%p90_p7)
}
  0x10   :  { %19 = dma.hbm_to_vmem [thread:$0]  %s168_s0, 128, %s17_s10, [#allocation4]  }
  0x11   :  { %116 = dma.done.wait [#allocation4], 128  }
  0x12   :  { %117 = vsyncadd [#allocation4], 4294967168  ;;  %vm28_vm0 = vcmask 7168   ;;  %v121_v0 = vmov 0.0   ;;  %v23_v1 = vld [vmem:[#allocation3] sm:$0xff]  ;;  %s122_s21 = smov [#allocation6]  }
  0x13   :  { %29 = vst.msk [vmem:[#allocation2] sm:$0xff] %vm28_vm0, %v121_v0  ;;  %v31_v2 = vmul.f32 %v23_v1, %v23_v1  ;;  %v37_v3 = vpack.c.bf16 %v23_v1, %v23_v1  ;;  %s54_s22 = sshll.u32 %s122_s21, 4  ;;  %s55_s22 = int_to_ptr.vmem [resolvable:$true] %s54_s22 }
  0x14   :  { %s94_s23 = scalar_lea.vmem %s55_s22, 64  ;;  %p99_p9 = scmp.lt.s32.totalorder %s55_s22, %s55_s22 }
  0x15   :  { %32 = vadd.xlane.f32.xlu0 %v31_v2  ;;  %38 = vst [vmem:[#allocation6] sm:$0xf] %v37_v3  ;;  %p95_p8 = scmp.ne.s32.totalorder %s55_s22, %s94_s23  ;;  %p100_p10 = scmp.lt.s32.totalorder %s94_s23, %s94_s23 }
  0x17   :  { %p101_p11 = por %p100_p10, %p99_p9 }
  0x19   :  { %p102_p12 = pnand %p101_p11, %p95_p8 }
  0x1b   :  { %105 = shalt.err (!%p102_p12)
}
  0x1c   :  { %s106_s25 = scalar_lea.hbm %s169_s1, 64 }
  0x1d   :  { %p107_p13 = scmp.ne.s32.totalorder %s169_s1, %s106_s25  ;;  %p110_p0 = scmp.lt.u32.totalorder %s106_s25, %s169_s1 }
  0x1f   :  { %p112_p1 = pnand %p110_p0, %p107_p13 }
  0x21   :  { %115 = shalt.err (!%p112_p1)
}
  0x22   :  { %57 = dma.vmem_to_hbm [thread:$0]  %s55_s22, 64, %s169_s1, [#allocation5]   ;;  %v30_v4 = vld [vmem:[#allocation2] sm:$0xff] }
  0xa2   :  { %v33_v5 = vpop.xlane.xlu0 %32 }
  0xa3   :  { %v34_v6 = vadd.f32 %v33_v5, %v30_v4 }
  0xa5   :  { %36 = vst.msk [vmem:[#allocation2] sm:$0xff] %vm28_vm0, %v34_v6 }
  0xac   :  { %v42_v7 = vld [vmem:[#allocation2] sm:$0xff] }
  0xad   :  { %v43_v8 = vmax.f32 %v42_v7, 1e-24  ;;  %vm45_vm1 = vcmp.gt.f32.partialorder %v42_v7, 0.0 }
  0xaf   :  { %70 = vrsqrt.f32 %v43_v8 }
  0xb9   :  { %v71_v9 = vpop.eup %70 }
  0xba   :  { %v46_v10 = vsel %vm45_vm1, %v71_v9, 0.0 }
  0xbb   :  { %47 = vst.msk [vmem:[%s170_s2] sm:$0xff] %vm28_vm0, %v46_v10 }
  0xbc   :  { %118 = dma.done.wait [#allocation5], 64  }
  0xbd   :  { %119 = vsyncadd [#allocation5], 4294967232 }
  0xbe   :  { %65 = vsyncpa [#allocation4], 1 }
  0xbf   :  { %66 = vsyncpa [#allocation5], 1 }

</bundles_post_ra>
